<compile_context>
chip_gen: v6e
topology: v6e:2x2x1
jax: 0.10.0
libtpu: 0.0.40
codegen_flags: <defaults>
</compile_context>

<pallas_src>
import functools

import jax
import jax.numpy as jnp
from jax import lax
from jax.experimental import pallas as pl
from jax.experimental.pallas import tpu as pltpu


def _conv1d_causal_s1_kernel(*refs, kernel_size, dilation, padding, tile_t, c_in, c_out,
                             has_prev):
    """One grid step = one (batch, time-tile) output block, stride-1 causal conv.

    refs (has_prev=True):  x_prev_ref, x_cur_ref, w_ref, b_ref, o_ref
    refs (has_prev=False): x_cur_ref, w_ref, b_ref, o_ref

    x_prev_ref: (1, C_in, TILE_T)  previous time tile (halo source)
    x_cur_ref:  (1, C_in, TILE_T)  current time tile
    w_ref:      (C_out, K*C_in)    weights, k-major along the contraction dim
    b_ref:      (C_out, 1)         bias column
    o_ref:      (1, C_out, TILE_T) output tile (time on lanes -> lane-dense store)
    """
    if has_prev:
        x_prev_ref, x_cur_ref, w_ref, b_ref, o_ref = refs
    else:
        x_cur_ref, w_ref, b_ref, o_ref = refs

    cur = x_cur_ref[0]                                       # (C_in, TILE_T), native dtype

    # Build the causal window [halo | cur] of width TILE_T + padding.
    if padding > 0:
        if has_prev:
            t = pl.program_id(1)
            halo = x_prev_ref[0, :, tile_t - padding:]       # last `padding` cols of prev tile
            halo = jnp.where(t == 0, jnp.zeros_like(halo), halo)   # fused causal left-pad
        else:
            halo = jnp.zeros((c_in, padding), dtype=cur.dtype)
        win = jnp.concatenate([halo, cur], axis=-1)          # (C_in, TILE_T + padding)
    else:
        win = cur

    # im2col: stack the K shifted windows along the contraction axis -> one MXU matmul.
    if kernel_size == 1:
        x_cat = win                                          # (C_in, TILE_T)
    else:
        taps = [lax.slice(win, (0, k * dilation), (c_in, k * dilation + tile_t))
                for k in range(kernel_size)]                 # each (C_in, TILE_T), contiguous
        x_cat = jnp.concatenate(taps, axis=0)                # (K*C_in, TILE_T)

    # Native-dtype operands, f32 accumulation on the MXU.
    acc = jnp.dot(w_ref[...], x_cat, preferred_element_type=jnp.float32)   # (C_out, TILE_T)
    acc = acc + b_ref[...].astype(jnp.float32)               # bias broadcasts over lanes
    o_ref[0] = acc.astype(o_ref.dtype)


def _choose_time_tile(t_len, padding, target):
    """Pick TILE_T: full length if it fits, else a multiple of 128 that covers the halo."""
    if t_len <= target:
        return t_len                      # single tile: block == full array dim is always legal
    tile = max(target, padding)           # halo must fit inside one previous tile
    return ((tile + 127) // 128) * 128    # lane-dense blocks for multi-tile runs


def conv1d_causal(x, weight, bias=None, *, stride=1, dilation=1, time_tile=512):
    """Causal conv1d with PyTorch Conv1dCausal semantics.

    x:      (B, C_in, T)        NCW (PyTorch layout, consumed directly — no transposes)
    weight: (C_out, C_in, K)    PyTorch Conv1d weight layout
    bias:   (C_out,) or None
    returns (B, C_out, T_out),  T_out = floor((T-1)/stride) + 1
    """
    B, c_in, T = x.shape
    c_out, c_in_w, K = weight.shape
    assert c_in_w == c_in, (c_in_w, c_in)
    padding = (K - 1) * dilation
    t_out = (T - 1) // stride + 1

    # The kernel always runs at stride 1 (full-rate output length == T); stride > 1 is a
    # cheap XLA subsample of the result below.
    tile_t = _choose_time_tile(T, padding, time_tile)
    num_t = -(-T // tile_t)
    t_pad = num_t * tile_t
    x_p = jnp.pad(x, ((0, 0), (0, 0), (0, t_pad - T))) if t_pad != T else x

    # Weight re-layout (tiny, wrapper-side): (C_out, C_in, K) -> (C_out, K*C_in), k-major,
    # matching the k-major im2col stacking inside the kernel.
    w_flat = jnp.transpose(weight, (0, 2, 1)).reshape(c_out, K * c_in)
    if bias is None:
        bias = jnp.zeros((c_out,), dtype=x.dtype)
    b_col = bias.reshape(c_out, 1)

    has_prev = (padding > 0) and (num_t > 1)

    kernel = functools.partial(
        _conv1d_causal_s1_kernel,
        kernel_size=K, dilation=dilation, padding=padding,
        tile_t=tile_t, c_in=c_in, c_out=c_out, has_prev=has_prev,
    )

    in_specs = []
    args = []
    if has_prev:
        # Previous time tile (clamped at t == 0; the kernel zero-masks the halo there).
        in_specs.append(
            pl.BlockSpec((1, c_in, tile_t), lambda b, t: (b, 0, jnp.maximum(t - 1, 0))))
        args.append(x_p)
    in_specs += [
        pl.BlockSpec((1, c_in, tile_t), lambda b, t: (b, 0, t)),
        pl.BlockSpec((c_out, K * c_in), lambda b, t: (0, 0)),
        pl.BlockSpec((c_out, 1), lambda b, t: (0, 0)),
    ]
    args += [x_p, w_flat, b_col]

    y_full = pl.pallas_call(
        kernel,
        out_shape=jax.ShapeDtypeStruct((B, c_out, t_pad), x.dtype),
        grid_spec=pltpu.PrefetchScalarGridSpec(
            num_scalar_prefetch=0,
            grid=(B, num_t),
            in_specs=in_specs,
            out_specs=pl.BlockSpec((1, c_out, tile_t), lambda b, t: (b, 0, t)),
        ),
        compiler_params=pltpu.CompilerParams(
            dimension_semantics=("parallel", "parallel"),   # shards over both TCs on v7x
            vmem_limit_bytes=32 * 1024 * 1024,              # safe on v5e/v6e/v7x
        ),
    )(*args)

    y_full = y_full[:, :, :T]
    if stride > 1:
        y_full = y_full[:, :, ::stride]   # full-rate -> strided output (length == t_out)
    assert y_full.shape == (B, c_out, t_out)
    return y_full


def _reference_conv1d_causal(x, weight, bias, *, stride=1, dilation=1):
    """Pure-JAX reference with PyTorch Conv1d causal semantics (for verification)."""
    K = weight.shape[-1]
    padding = (K - 1) * dilation
    y = lax.conv_general_dilated(
        x, weight,
        window_strides=(stride,),
        padding=[(padding, 0)],
        rhs_dilation=(dilation,),
        dimension_numbers=("NCH", "OIH", "NCH"),
    )
    return y + bias[None, :, None]


if __name__ == "__main__":
    key = jax.random.PRNGKey(0)
    configs = [
        # (B, C_in, C_out, T,   K, stride, dilation, time_tile)
        (2, 4,  8,  16,  3, 1, 2, 512),   # tiny single-tile case (Conv1dCausal(4, 8, 3, 1, dilation=2))
        (2, 8, 16, 384,  3, 1, 2, 128),   # multi-tile: exercises the prev-tile halo path
        (1, 4,  8,  33,  3, 2, 1, 512),   # stride=2: full-rate kernel + XLA subsample
    ]

    ok = True
    for (B, C_IN, C_OUT, T, K, STRIDE, DIL, TT) in configs:
        kx, kw, kb, key = jax.random.split(key, 4)
        x = jax.random.normal(kx, (B, C_IN, T), dtype=jnp.float32)
        weight = jax.random.normal(kw, (C_OUT, C_IN, K), dtype=jnp.float32) * 0.1
        bias = jax.random.normal(kb, (C_OUT,), dtype=jnp.float32) * 0.1

        y = conv1d_causal(x, weight, bias, stride=STRIDE, dilation=DIL, time_tile=TT)
        y = jax.block_until_ready(y)

        y_ref = _reference_conv1d_causal(x, weight, bias, stride=STRIDE, dilation=DIL)
        assert y.shape == y_ref.shape, (y.shape, y_ref.shape)
        err = float(jnp.max(jnp.abs(y - y_ref)))
        assert err < 1e-4, err

    if ok:
        print("KERNEL_OK")
</pallas_src>

<mosaic_0001>
module attributes {stable_mosaic.version = 11 : i64} {
  func.func @_conv1d_causal_s1_kernel(%arg0: i32, %arg1: i32, %arg2: memref<1x4x16xf32, #tpu.memory_space<vmem>>, %arg3: memref<8x12xf32, #tpu.memory_space<vmem>>, %arg4: memref<8x1xf32, #tpu.memory_space<vmem>>, %arg5: memref<1x8x16xf32, #tpu.memory_space<vmem>>) attributes {dimension_semantics = [#tpu.dimension_semantics<parallel>, #tpu.dimension_semantics<parallel>], iteration_bounds = array<i64: 2, 1>, scalar_prefetch = 0 : i64, scratch_operands = 0 : i64, tpu.core_type = #tpu.core_type<tc>, window_params = [{transform_indices = @transform_0, window_bounds = array<i64: 1, 4, 16>}, {pipeline_mode = #tpu.pipeline_mode<synchronous>, transform_indices = @transform_1, window_bounds = array<i64: 8, 12>}, {pipeline_mode = #tpu.pipeline_mode<synchronous>, transform_indices = @transform_2, window_bounds = array<i64: 8, 1>}, {transform_indices = @transform_3, window_bounds = array<i64: 1, 8, 16>}]} {
    %c0 = arith.constant 0 : index
    %c0_0 = arith.constant 0 : index
    %c0_1 = arith.constant 0 : index
    %0 = vector.load %arg2[%c0, %c0_0, %c0_1] : memref<1x4x16xf32, #tpu.memory_space<vmem>>, vector<1x4x16xf32>
    %1 = vector.shape_cast %0 : vector<1x4x16xf32> to vector<4x16xf32>
    %cst = arith.constant 0.000000e+00 : f32
    %2 = vector.broadcast %cst : f32 to vector<4x4xf32>
    %3 = tpu.concatenate %2, %1 in 1 : vector<4x4xf32>, vector<4x16xf32> -> vector<4x20xf32>
    %4 = vector.extract_strided_slice %3 {offsets = [0, 0], sizes = [4, 16], strides = [1, 1]} : vector<4x20xf32> to vector<4x16xf32>
    %5 = vector.extract_strided_slice %3 {offsets = [0, 2], sizes = [4, 16], strides = [1, 1]} : vector<4x20xf32> to vector<4x16xf32>
    %6 = vector.extract_strided_slice %3 {offsets = [0, 4], sizes = [4, 16], strides = [1, 1]} : vector<4x20xf32> to vector<4x16xf32>
    %7 = tpu.concatenate %4, %5, %6 in 0 : vector<4x16xf32>, vector<4x16xf32>, vector<4x16xf32> -> vector<12x16xf32>
    %c0_2 = arith.constant 0 : index
    %c0_3 = arith.constant 0 : index
    %8 = vector.load %arg3[%c0_2, %c0_3] : memref<8x12xf32, #tpu.memory_space<vmem>>, vector<8x12xf32>
    %cst_4 = arith.constant dense<0.000000e+00> : vector<8x16xf32>
    %9 = tpu.matmul %8, %7, %cst_4 {dimension_numbers = #tpu.dot_dimension_numbers<[1], [0], [0], [1], [0, 0, 1, 1], [], []>} : vector<8x12xf32>, vector<12x16xf32>, vector<8x16xf32> -> vector<8x16xf32>
    %c0_5 = arith.constant 0 : index
    %c0_6 = arith.constant 0 : index
    %10 = vector.load %arg4[%c0_5, %c0_6] : memref<8x1xf32, #tpu.memory_space<vmem>>, vector<8x1xf32>
    %11 = vector.broadcast %10 : vector<8x1xf32> to vector<8x16xf32>
    %12 = arith.addf %9, %11 : vector<8x16xf32>
    %c0_7 = arith.constant 0 : index
    %c0_8 = arith.constant 0 : index
    %c0_9 = arith.constant 0 : index
    %13 = vector.load %arg5[%c0_7, %c0_8, %c0_9] : memref<1x8x16xf32, #tpu.memory_space<vmem>>, vector<1x8x16xf32>
    %14 = vector.shape_cast %13 : vector<1x8x16xf32> to vector<8x16xf32>
    %15 = vector.shape_cast %12 : vector<8x16xf32> to vector<1x8x16xf32>
    tpu.vector_store %arg5[%c0_7, %c0_8, %c0_9], %15 {strides = array<i32>} : memref<1x8x16xf32, #tpu.memory_space<vmem>>, vector<1x8x16xf32>,
    return
  }
  func.func @transform_0(%arg0: i32, %arg1: i32) -> (i32, i32, i32) {
    %c0_i32 = arith.constant 0 : i32
    %c0_i32_0 = arith.constant 0 : i32
    return %arg0, %c0_i32, %arg1 : i32, i32, i32
  }
  func.func @transform_1(%arg0: i32, %arg1: i32) -> (i32, i32) {
    %c0_i32 = arith.constant 0 : i32
    %c0_i32_0 = arith.constant 0 : i32
    %c0_i32_1 = arith.constant 0 : i32
    return %c0_i32, %c0_i32_0 : i32, i32
  }
  func.func @transform_2(%arg0: i32, %arg1: i32) -> (i32, i32) {
    %c0_i32 = arith.constant 0 : i32
    %c0_i32_0 = arith.constant 0 : i32
    %c0_i32_1 = arith.constant 0 : i32
    return %c0_i32, %c0_i32_0 : i32, i32
  }
  func.func @transform_3(%arg0: i32, %arg1: i32) -> (i32, i32, i32) {
    %c0_i32 = arith.constant 0 : i32
    %c0_i32_0 = arith.constant 0 : i32
    return %arg0, %c0_i32, %arg1 : i32, i32, i32
  }
}

</mosaic_0001>

<bundles_post_ra>
// kernel: tpu_custom_call.1
= control target key start
LH: loop header
LB: loop body
LE: loop exit
PB: predicated region body
PF: predicated region fallthrough
CT: control target
= control target key end

     0   :  { %8 = vsyncpa [#allocation3], 0  ;;  %s767_s0 = inlined_call_operand.vmem [shape: f32[2,4,16], index: 0, kind: input, shape index: {}]   ;;  %s768_s1 = inlined_call_operand.hbm [shape: f32[8,12], index: 1, kind: input, shape index: {}]   ;;  %s769_s2 = inlined_call_operand.vmem [shape: f32[8,1], index: 2, kind: input, shape index: {}]   ;;  %s770_s3 = inlined_call_operand.hbm [shape: f32[2,8,16], index: 3, kind: output, shape index: {}]  }
   0x1   :  { %9 = vsyncpa [#allocation4], 0 }
   0x2   :  { %11 = vsyncpa [#allocation4 + $0x1], 0  ;;  %s638_s12 = smov 0   ;;  %s640_s13 = smov 0  }
   0x3   :  { %s642_s14 = smov 0   ;;  %s644_s15 = smov 0  }
   0x4   :  { %s646_s16 = smov 0   ;;  %s648_s17 = smov 0  }
   0x5 LB: > { %s403_s18 = sadd.s32 4294967295, %s608_s17   ;;  %s404_s19 = sadd.s32 4294967294, %s608_s17   ;;  %s608_s17 = sphi %s648_s17, %s17_s17   ;;  %s604_s16 = sphi %s646_s16, %s779_s16   ;;  %s600_s15 = sphi %s644_s15, %s778_s15   ;;  %s596_s14 = sphi %s642_s14, %s777_s14   ;;  %s592_s13 = sphi %s640_s13, %s776_s13   ;;  %s588_s12 = sphi %s638_s12, %s775_s12  }
   0x6   : > { %s29_s20 = sadd.s32 1, %s604_s16  ;;  %s108_s21 = sadd.s32 1, %s596_s14 }
   0x7   : > { %p31_p0 = scmp.ge.s32.totalorder %s29_s20, 2  ;;  %p118_p1 = scmp.ne.s32.totalorder %s596_s14, %s592_s13 }
   0x8   : > { %p119_p2 = scmp.eq.s32.totalorder %s403_s18, 1  ;;  %p124_p3 = scmp.ne.s32.totalorder %s592_s13, %s588_s12 }
   0x9   : > { %s781_s20 = smov (%p31_p0, %s29_s20), 0  ;;  %p125_p5 = scmp.eq.s32.totalorder %s404_s19, 1 }
   0xa   : > { %p678_p4 = por %p119_p2, %p118_p1  ;;  %s103_s23 = ssub.s32 %s604_s16, %s781_s20 }
   0xb   : > { %p405_p6 = scmp.ge.s32.totalorder %s608_s17, 1  ;;  %p106_p7 = scmp.eq.s32.totalorder %s103_s23, 0 }
   0xc   : > { %p685_p8 = por %p125_p5, %p124_p3  ;;  %p132_p9 = scmp.lt.s32.totalorder %s608_s17, 3 }
   0xd   : > { %s691_s25 = scalar_select %p106_p7, %s596_s14, %s108_s21  }
   0xe   : > { %p693_p10 = pnand %p405_p6, %p132_p9  ;;  %p697_p11 = scmp.eq.s32.totalorder %s403_s18, 0 }
   0xf   : > { %s610_s28 = smov [#allocation2]  }
  0x10   : > { %p434_p12 = pneg %p693_p10  ;;  %s145_s29 = sshll.u32 %s610_s28, 4  ;;  %s146_s29 = int_to_ptr.vmem [resolvable:$true] %s145_s29 }
  0x11   : > { %s513_s30 = scalar_lea.vmem %s146_s29, 128  ;;  %p521_p5 = scmp.lt.s32.totalorder %s146_s29, %s146_s29 }
  0x12   : > { %p435_p13 = pnand %p697_p11, %p434_p12  ;;  %p514_p1 = scmp.ne.s32.totalorder %s146_s29, %s513_s30 }
  0x13   : > { %p522_p6 = scmp.lt.s32.totalorder %s513_s30, %s513_s30 }
  0x14   : > { %p504_p0 = pneg %p435_p13 }
  0x15   : > { %p523_p7 = por %p522_p6, %p521_p5 }
  0x16   : > { %p516_p2 = pnand %p514_p1, %p504_p0 }
  0x18   : > { %p517_p3 = pneg %p516_p2 }
  0x1a   : > { %p524_p9 = pnand %p523_p7, %p517_p3 }
  0x1c   : > { %527 = shalt.err (!%p524_p9)
}
  0x1d   : > { %437 = dma.hbm_to_vmem [thread:$0]  (!%p435_p13), %s768_s1, 128, %s146_s29, [#allocation3]  }
  0x1e   : > { %171 = sbr.rel (%p693_p10) target bundleno = 486 (0x1e6), region = 32 }
  0x23   : > { %579 = dma.done.wait (%p697_p11), [#allocation3], 128  }
  0x24   : > { %581 = vsyncadd (%p697_p11), [#allocation3], 4294967168  ;;  %p197_p12 = scmp.lt.s32.totalorder %s600_s15, 1  ;;  %v611_v0 = vmov 0.0   ;;  %s612_s11 = smov 4   ;;  %vm613_vm0 = vmmov 0  }
  0x25   : > { %421 = vmatprep.subr.mxu0 %v611_v0  ;;  %425 = vmatprep.mubr.msk.f32.mxu0 %vm613_vm0, %v611_v0  ;;  %v614_v2 = vmov 0   ;;  %vm209_vm1 = vcmask 31744   ;;  %s615_s18 = smov 124   ;;  %s616_s19 = smov 126   ;;  %v221_v6 = vld [vmem:[%s769_s2] sm:$0xff]  ;;  %vm218_vm2 = vcmask 1043456  }
  0x26   : > { %s198_s6 = scalar_select %p197_p12, %s600_s15, 1  ;;  %500 = vset.pattern.permute.xlu1 %v614_v2  ;;  %501 = vset.pattern.permute.xlu0 %v614_v2  ;;  %v220_v9 = vld [vmem:[#allocation2] sm:$0xff]  ;;  %vm227_vm3 = vcmask 97280   ;;  %vm303_vm4 = vcmask 130048  }
  0x27   : > { %s194_s26 = sand.u32 1, %s592_s13   ;;  %s415_s28 = sshll.u32 %s600_s15, 7 }
  0x28   : > { %s411_s7 = sshll.u32 %s198_s6, 2  ;;  %s410_s27 = sshll.u32 %s194_s26, 3 }
  0x29   : > { %s203_s10 = scalar_lea.vmem %s767_s0, %s411_s7  ;;  %s196_s29 = scalar_lea.vmem [#allocation5], %s410_s27 }
  0x2a   : > { %v204_v1 = vld [vmem:[%s203_s10] sm:$0xf]  ;;  %s320_s30 = sshll.u32 %s196_s29, 4  ;;  %s727_s6 = scalar_lea.hbm %s770_s3, %s415_s28  ;;  %s321_s30 = int_to_ptr.vmem [resolvable:$true] %s320_s30 }
  0x2b   : > { %206 = vrot.lane.b32.xlu0 %v204_v1, %s612_s11  ;;  %s306_s7 = scalar_lea.sflag [#allocation4], %s194_s26  ;;  %s528_s8 = scalar_lea.vmem %s321_s30, 128 }
  0x2c   : > { %p529_p10 = scmp.ne.s32.totalorder %s321_s30, %s528_s8  ;;  %s617_s15 = smov [#allocation5]  }
  0x2d   : > { %s532_s9 = sshll.u32 %s617_s15, 4  ;;  %s533_s9 = int_to_ptr.vmem [resolvable:$false] %s532_s9 }
  0x2e   : > { %p530_p11 = pnand %p529_p10, %p678_p4  ;;  %s534_s10 = scalar_lea.vmem %s533_s9, 256 }
  0x2f   : > { %p535_p0 = scmp.lt.s32.totalorder %s321_s30, %s533_s9  ;;  %p536_p1 = scmp.lt.s32.totalorder %s534_s10, %s528_s8 }
  0x30   : > { %p531_p13 = pneg %p530_p11 }
  0x31   : > { %p537_p2 = por %p536_p1, %p535_p0 }
  0x33   : > { %p538_p3 = pnand %p537_p2, %p531_p13 }
  0x9d   : > { %v207_v3 = vpop.permute.xlu0 %206 }
  0x9e   : > { %v210_v4 = vsel %vm209_vm1, 0.0, %v207_v3 }
  0x9f   : > { %216 = vrot.lane.b32.xlu0 %v210_v4, %s615_s18  ;;  %v212_v5 = vrot.slane %v210_v4, 4 }
  0xa1   : > { %213 = vrot.lane.b32.xlu1 %v212_v5, %s616_s19 }
  0xa5   : > { %224 = vperm.xlu1 %500, %v221_v6  }
 0x111   : > { %v217_v7 = vpop.permute.xlu0 %216 }
 0x112   : > { %422 = vmatpush3.msk.msra.mxu0 %vm218_vm2, %v217_v7 }
 0x113   : > { %v214_v8 = vpop.permute.xlu1 %213  ;;  %423 = vmatprep.subr.mxu0 %v611_v0 }
 0x114   : > { %v219_v10 = vsel %vm218_vm2, %v210_v4, %v214_v8 }
 0x115   : > { %424 = vmatpush3.msra.mxu0 %v219_v10 }
 0x116   : > { %426 = vmatmul.mubr.msk.f32.vlgmr.msra.gmra.mxu0 %vm227_vm3, %v220_v9 }
 0x120   : > { %v225_v11 = vpop.permute.xlu1 %224 }
 0x1d6   : > { %v299_v12 = vpop.f32.mrf.mxu0 }
 0x1d7   : > { %v300_v13 = vadd.f32 %v299_v12, %v225_v11 }
 0x1d8   : > { %v427_v14 = vpop.f32.mrf.mxu0 }
 0x1d9   : > { %304 = vst.msk [vmem:[%s196_s29] sm:$0xff] %vm303_vm4, %v300_v13 }
 0x1da   : > { %541 = shalt.err (!%p538_p3)
}
 0x1db   : > { %s542_s11 = scalar_lea.hbm %s727_s6, 128  ;;  %s546_s21 = scalar_lea.hbm %s770_s3, 256 }
 0x1dc   : > { %p543_p5 = scmp.ne.s32.totalorder %s727_s6, %s542_s11  ;;  %p547_p9 = scmp.lt.s32.totalorder %s727_s6, %s770_s3 }
 0x1dd   : > { %p548_p12 = scmp.lt.s32.totalorder %s546_s21, %s542_s11 }
 0x1de   : > { %p544_p6 = pnand %p543_p5, %p678_p4 }
 0x1df   : > { %p549_p10 = por %p548_p12, %p547_p9 }
 0x1e0   : > { %p545_p7 = pneg %p544_p6 }
 0x1e2   : > { %p550_p11 = pnand %p549_p10, %p545_p7 }
 0x1e4   : > { %553 = shalt.err (!%p550_p11)
}
 0x1e5   : > { %432 = dma.vmem_to_hbm [thread:$0]  (%p678_p4), %s321_s30, 128, %s727_s6, %s306_s7  }
 0x1e6 PF: > { %p444_p13 = scmp.ge.s32.totalorder %s608_s17, 2  ;;  %s332_s27 = sand.u32 1, %s588_s12  }
 0x1e7   : > { %s333_s28 = scalar_lea.sflag [#allocation4], %s332_s27 }
 0x1e8   : > { %p439_p0 = pnand %p444_p13, %p685_p8 }
 0x1ea   : > { %p440_p1 = pneg %p439_p0 }
 0x1ec   : > { %583 = dma.done.wait (%p440_p1), %s333_s28, 128  }
 0x1ed   : > { %585 = vsyncadd (%p440_p1), %s333_s28, 4294967168  ;;  %s17_s17 = sadd.s32 1, %s608_s17   ;;  %s775_s12 = smov %s592_s13 }
 0x1ee   : > { %p14_p2 = scmp.ge.s32.totalorder %s17_s17, 4   ;;  %s776_s13 = smov %s596_s14 }
 0x1ef   : > { %s777_s14 = smov %s691_s25  ;;  %s778_s15 = smov %s604_s16 }
 0x1f0   : > { %s779_s16 = smov %s781_s20  ;;  %16 = sbr.rel (!%p14_p2) target bundleno = 5 (0x5), region = 72 }
 0x1f5   :  { %338 = vsyncpa [#allocation3], 1 }
 0x1f6   :  { %340 = vsyncpa [#allocation3 + $0x1], 1 }
 0x1f7   :  { %341 = vsyncpa [#allocation4], 1 }
 0x1f8   :  { %343 = vsyncpa [#allocation4 + $0x1], 1 }

</bundles_post_ra>
